<compile_context>
chip_gen: v7x
topology: tpu7x:2x2x1
jax: 0.10.0
libtpu: 0.0.40
codegen_flags: <defaults>
</compile_context>

<pallas_src>
import functools

import jax
import jax.numpy as jnp
from jax.experimental import pallas as pl
from jax.experimental.pallas import tpu as pltpu


# ----------------------------------------------------------------------------
# Kernels
# ----------------------------------------------------------------------------
def _mm_bias_kernel(x_ref, w_ref, b_ref, o_ref, *, relu):
    # 1x1 conv as (tm, cin) @ (cin, cout) matmul; BN scale already folded in w.
    y = jnp.dot(x_ref[...], w_ref[...], preferred_element_type=jnp.float32)
    y = y + b_ref[...]
    if relu:
        y = jnp.maximum(y, 0.0)
    o_ref[...] = y.astype(o_ref.dtype)


def _mm_bias_add_kernel(x_ref, w_ref, b_ref, id_ref, o_ref, *, relu):
    # 1x1 conv + bias + residual add (+ ReLU).
    y = jnp.dot(x_ref[...], w_ref[...], preferred_element_type=jnp.float32)
    y = y + b_ref[...] + id_ref[...].astype(jnp.float32)
    if relu:
        y = jnp.maximum(y, 0.0)
    o_ref[...] = y.astype(o_ref.dtype)


def _conv3x3_bias_relu_kernel(x_ref, w_ref, b_ref, o_ref, *, h, w):
    # x_ref: (1, h+2, w+2, cin)  padded image for ONE batch element (halo in VMEM)
    # w_ref: (9, cin, cout)      BN scale folded into the weights
    # b_ref: (1, cout)
    # o_ref: (1, h*w, cout)
    cin = x_ref.shape[3]
    cout = o_ref.shape[2]
    acc = jnp.zeros((h * w, cout), jnp.float32)
    for dy in range(3):
        for dx in range(3):
            patch = x_ref[0, pl.ds(dy, h), pl.ds(dx, w), :]     # (h, w, cin)
            patch = patch.reshape(h * w, cin)
            acc = acc + jnp.dot(patch, w_ref[dy * 3 + dx],
                                preferred_element_type=jnp.float32)
    y = acc + b_ref[...]
    o_ref[0] = jnp.maximum(y, 0.0).astype(o_ref.dtype)


def _tail_pool_kernel(o2_ref, x_ref, w3_ref, wd_ref, b_ref, o_ref,
                      p2_ref, px_ref, *, s, w, bt):
    # Fused: avgpool(s) of both branches + conv3 (1x1) + downsample conv (1x1)
    #        + (bn3 + bn_d biases) + residual add + ReLU.
    # o2_ref: (bt*s*w, planes)  conv2-output rows for bt (n, ho) row groups
    # x_ref : (bt*s*w, cin)     block-input rows for the same groups
    # p2_ref/px_ref: f32 VMEM scratch (bt*wo, planes)/(bt*wo, cin) for the pooled rows
    wo = w // s
    inv = 1.0 / (s * s)

    def pool_into(src_ref, dst_ref):
        for b in range(bt):
            base = b * s * w
            acc = jnp.zeros((wo, src_ref.shape[1]), jnp.float32)
            for i in range(s):
                for j in range(s):
                    if s > 1:
                        sl = pl.ds(base + i * w + j, wo, stride=s)
                    else:
                        sl = pl.ds(base, wo)
                    acc = acc + src_ref[sl, :].astype(jnp.float32)
            dst_ref[pl.ds(b * wo, wo), :] = acc * inv

    pool_into(o2_ref, p2_ref)
    pool_into(x_ref, px_ref)

    y = jnp.dot(p2_ref[...].astype(w3_ref.dtype), w3_ref[...],
                preferred_element_type=jnp.float32)
    y = y + jnp.dot(px_ref[...].astype(wd_ref.dtype), wd_ref[...],
                    preferred_element_type=jnp.float32)
    y = y + b_ref[...]
    o_ref[...] = jnp.maximum(y, 0.0).astype(o_ref.dtype)


# ----------------------------------------------------------------------------
# Pallas wrappers
# ----------------------------------------------------------------------------
def _pick_tm(m, target=512):
    # Large, sublane-aligned row tiles; never fall back to the whole array when
    # m is big (Pallas masks the ragged tail block).
    return m if m <= target else target


def conv1x1_bias(x2d, w, bias, identity2d=None, relu=True):
    """Fused 1x1 conv (matmul, BN scale pre-folded) + bias (+ residual) (+ ReLU)."""
    m, cin = x2d.shape
    cout = w.shape[1]
    tm = _pick_tm(m)
    grid = (pl.cdiv(m, tm),)
    b2 = bias.reshape(1, cout).astype(jnp.float32)

    in_specs = [pl.BlockSpec((tm, cin), lambda i: (i, 0)),
                pl.BlockSpec((cin, cout), lambda i: (0, 0)),
                pl.BlockSpec((1, cout), lambda i: (0, 0))]
    args = [x2d, w, b2]
    if identity2d is None:
        kernel = functools.partial(_mm_bias_kernel, relu=relu)
        id_bytes = 0
    else:
        kernel = functools.partial(_mm_bias_add_kernel, relu=relu)
        in_specs.append(pl.BlockSpec((tm, cout), lambda i: (i, 0)))
        args.append(identity2d)
        id_bytes = identity2d.size * identity2d.dtype.itemsize

    flops = 2 * m * cin * cout
    bytes_accessed = int(x2d.size * x2d.dtype.itemsize
                         + w.size * w.dtype.itemsize
                         + m * cout * x2d.dtype.itemsize + id_bytes)
    return pl.pallas_call(
        kernel,
        out_shape=jax.ShapeDtypeStruct((m, cout), x2d.dtype),
        grid=grid,
        in_specs=in_specs,
        out_specs=pl.BlockSpec((tm, cout), lambda i: (i, 0)),
        compiler_params=pltpu.CompilerParams(dimension_semantics=("parallel",)),
        cost_estimate=pl.CostEstimate(flops=int(flops), transcendentals=0,
                                      bytes_accessed=bytes_accessed),
    )(*args)


def conv3x3_bias_relu(x_nhwc, w_folded, bias):
    """Fused 3x3 conv (pad=1, stride=1, BN scale pre-folded) + bias + ReLU.

    Grid over batch; the padded image for one batch element is resident in VMEM
    and the 9 shifted matmuls read in-VMEM slices (no im2col in HBM).
    """
    n, h, w, cin = x_nhwc.shape
    cout = w_folded.shape[3]
    xp = jnp.pad(x_nhwc, ((0, 0), (1, 1), (1, 1), (0, 0)))     # one cheap pad pass
    wk = w_folded.reshape(9, cin, cout)
    b2 = bias.reshape(1, cout).astype(jnp.float32)

    kernel = functools.partial(_conv3x3_bias_relu_kernel, h=h, w=w)
    flops = 2 * n * h * w * 9 * cin * cout
    bytes_accessed = int(xp.size * xp.dtype.itemsize
                         + wk.size * wk.dtype.itemsize
                         + n * h * w * cout * x_nhwc.dtype.itemsize)
    out = pl.pallas_call(
        kernel,
        out_shape=jax.ShapeDtypeStruct((n, h * w, cout), x_nhwc.dtype),
        grid=(n,),
        in_specs=[pl.BlockSpec((1, h + 2, w + 2, cin), lambda i: (i, 0, 0, 0)),
                  pl.BlockSpec((9, cin, cout), lambda i: (0, 0, 0)),
                  pl.BlockSpec((1, cout), lambda i: (0, 0))],
        out_specs=pl.BlockSpec((1, h * w, cout), lambda i: (i, 0, 0)),
        compiler_params=pltpu.CompilerParams(dimension_semantics=("parallel",)),
        cost_estimate=pl.CostEstimate(flops=int(flops), transcendentals=0,
                                      bytes_accessed=bytes_accessed),
    )(xp, wk, b2)
    return out.reshape(n, h, w, cout)


def tail_pool_conv_add_relu(out2_nhwc, x_nhwc, w3, wd, bias, s):
    """Fused avgpool(s) + conv3 + downsample-conv + biases + residual add + ReLU."""
    n, h, w, planes = out2_nhwc.shape
    cin = x_nhwc.shape[3]
    cout = w3.shape[1]
    ho, wo = h // s, w // s
    ngroups = n * ho                      # one group = one output row (n, ho)

    # groups per grid step: keep ~512 matmul rows, sublane-aligned output block.
    bt = None
    for d in sorted((d for d in range(1, ngroups + 1) if ngroups % d == 0),
                    reverse=True):
        if d * wo <= 512 and (d * wo) % 8 == 0:
            bt = d
            break
    if bt is None:
        bt = ngroups                      # whole array in one block (always legal)

    o2_rows = out2_nhwc.reshape(n * h * w, planes)   # metadata-only reshapes
    x_rows = x_nhwc.reshape(n * h * w, cin)
    b2 = bias.reshape(1, cout).astype(jnp.float32)
    rows_in = bt * s * w
    rows_out = bt * wo
    grid = (ngroups // bt,)

    kernel = functools.partial(_tail_pool_kernel, s=s, w=w, bt=bt)
    flops = 2 * n * ho * wo * (planes + cin) * cout
    bytes_accessed = int(o2_rows.size * o2_rows.dtype.itemsize
                         + x_rows.size * x_rows.dtype.itemsize
                         + (w3.size + wd.size) * w3.dtype.itemsize
                         + n * ho * wo * cout * out2_nhwc.dtype.itemsize)
    return pl.pallas_call(
        kernel,
        out_shape=jax.ShapeDtypeStruct((n * ho * wo, cout), out2_nhwc.dtype),
        grid=grid,
        in_specs=[pl.BlockSpec((rows_in, planes), lambda i: (i, 0)),
                  pl.BlockSpec((rows_in, cin), lambda i: (i, 0)),
                  pl.BlockSpec((planes, cout), lambda i: (0, 0)),
                  pl.BlockSpec((cin, cout), lambda i: (0, 0)),
                  pl.BlockSpec((1, cout), lambda i: (0, 0))],
        out_specs=pl.BlockSpec((rows_out, cout), lambda i: (i, 0)),
        scratch_shapes=[pltpu.VMEM((rows_out, planes), jnp.float32),
                        pltpu.VMEM((rows_out, cin), jnp.float32)],
        compiler_params=pltpu.CompilerParams(dimension_semantics=("parallel",)),
        cost_estimate=pl.CostEstimate(flops=int(flops), transcendentals=0,
                                      bytes_accessed=bytes_accessed),
    )(o2_rows, x_rows, w3, wd, b2)


# ----------------------------------------------------------------------------
# Bottleneck forward (NCHW in / NCHW out, matching PyTorch)
# ----------------------------------------------------------------------------
def bottleneck_forward(x_nchw, fp, stride):
    """fp: folded params (BN scale folded into conv weights, f32 biases)."""
    x = jnp.transpose(x_nchw, (0, 2, 3, 1))            # -> NHWC
    n, h, w, cin = x.shape
    planes = fp["w1"].shape[1]
    cout = fp["w3"].shape[1]

    # conv1 (1x1) + bn1 + relu
    out = conv1x1_bias(x.reshape(n * h * w, cin), fp["w1"], fp["b1"],
                       relu=True).reshape(n, h, w, planes)

    # conv2 (3x3, pad=1) + bn2 + relu  (halo in VMEM, no im2col)
    out = conv3x3_bias_relu(out, fp["w2"], fp["b2"])

    ho, wo = h // stride, w // stride
    if fp.get("wd") is not None:
        # downsample path: fused avgpool + conv3/bn3 + downsample conv/bn
        #                  + residual add + relu (single HBM pass)
        out2d = tail_pool_conv_add_relu(out, x, fp["w3"], fp["wd"],
                                        fp["b3"] + fp["bd"], stride)
    else:
        # stride == 1 and cin == cout: plain identity residual, no pooling.
        out2d = conv1x1_bias(out.reshape(n * h * w, planes), fp["w3"], fp["b3"],
                             identity2d=x.reshape(n * h * w, cin), relu=True)

    out = out2d.reshape(n, ho, wo, cout)
    return jnp.transpose(out, (0, 3, 1, 2))             # -> NCHW


# ----------------------------------------------------------------------------
# Parameter init (shapes from Bottleneck.__init__) and BN folding
# ----------------------------------------------------------------------------
def init_params(key, inplanes, planes, stride, eps=1e-5):
    expansion = 4
    cout = planes * expansion
    ks = jax.random.split(key, 8)

    def conv_w(k, kh, kw, ci, co):
        fan_in = kh * kw * ci
        return (jax.random.normal(k, (kh, kw, ci, co), jnp.float32)
                / jnp.sqrt(jnp.float32(fan_in)))

    def bn_fold(k, c):
        k1, k2, k3, k4 = jax.random.split(k, 4)
        gamma = 1.0 + 0.1 * jax.random.normal(k1, (c,), jnp.float32)
        beta = 0.1 * jax.random.normal(k2, (c,), jnp.float32)
        mean = 0.05 * jax.random.normal(k3, (c,), jnp.float32)
        var = jax.random.uniform(k4, (c,), jnp.float32, minval=0.5, maxval=1.5)
        scale = gamma / jnp.sqrt(var + eps)
        bias = beta - mean * scale
        return scale, bias

    p = {}
    p["w1"] = conv_w(ks[0], 1, 1, inplanes, planes)[0, 0]    # (cin, planes)
    p["s1"], p["b1"] = bn_fold(ks[1], planes)
    p["w2"] = conv_w(ks[2], 3, 3, planes, planes)             # (3,3,planes,planes)
    p["s2"], p["b2"] = bn_fold(ks[3], planes)
    p["w3"] = conv_w(ks[4], 1, 1, planes, cout)[0, 0]         # (planes, 4*planes)
    p["s3"], p["b3"] = bn_fold(ks[5], cout)
    if stride > 1 or inplanes != cout:
        p["wd"] = conv_w(ks[6], 1, 1, inplanes, cout)[0, 0]   # (cin, 4*planes)
        p["sd"], p["bd"] = bn_fold(ks[7], cout)
    else:
        p["wd"] = None
    return p


def fold_params(p, dtype=jnp.float32):
    """Fold BN scale into conv weights (inference mode); biases stay f32."""
    fp = {
        "w1": (p["w1"] * p["s1"][None, :]).astype(dtype),
        "b1": p["b1"].astype(jnp.float32),
        "w2": (p["w2"] * p["s2"][None, None, None, :]).astype(dtype),
        "b2": p["b2"].astype(jnp.float32),
        "w3": (p["w3"] * p["s3"][None, :]).astype(dtype),
        "b3": p["b3"].astype(jnp.float32),
    }
    if p.get("wd") is not None:
        fp["wd"] = (p["wd"] * p["sd"][None, :]).astype(dtype)
        fp["bd"] = p["bd"].astype(jnp.float32)
    else:
        fp["wd"] = None
    return fp


# ----------------------------------------------------------------------------
# Pure-JAX reference (for correctness check)
# ----------------------------------------------------------------------------
def reference_forward(x_nchw, p, stride):
    x = jnp.transpose(x_nchw, (0, 2, 3, 1))

    def conv(z, w_hwio, pad):
        return jax.lax.conv_general_dilated(
            z, w_hwio, window_strides=(1, 1), padding=pad,
            dimension_numbers=("NHWC", "HWIO", "NHWC"))

    def pool(z, s):
        if s <= 1:
            return z
        n, h, w, c = z.shape
        return z.reshape(n, h // s, s, w // s, s, c).mean(axis=(2, 4))

    out = jax.nn.relu(conv(x, p["w1"][None, None], "VALID") * p["s1"] + p["b1"])
    out = jax.nn.relu(conv(out, p["w2"], "SAME") * p["s2"] + p["b2"])
    out = pool(out, stride)
    out = conv(out, p["w3"][None, None], "VALID") * p["s3"] + p["b3"]
    if p.get("wd") is not None:
        idn = conv(pool(x, stride), p["wd"][None, None], "VALID") * p["sd"] + p["bd"]
    else:
        idn = x
    out = jax.nn.relu(out + idn)
    return jnp.transpose(out, (0, 3, 1, 2))


# ----------------------------------------------------------------------------
if __name__ == "__main__":
    key = jax.random.PRNGKey(0)

    def run_case(inplanes, planes, stride, n=2, h=16, w=16,
                 dtype=jnp.float32, rtol=1e-4, atol=1e-4):
        kcase = jax.random.fold_in(key, inplanes * 1000 + planes * 10 + stride)
        kx, kp = jax.random.split(kcase)
        x = jax.random.normal(kx, (n, inplanes, h, w), jnp.float32)   # NCHW
        p = init_params(kp, inplanes, planes, stride)
        fp = fold_params(p, dtype=dtype)

        out = bottleneck_forward(x.astype(dtype), fp, stride)
        out = jax.block_until_ready(out)
        assert out.shape == (n, planes * 4, h // stride, w // stride), out.shape

        ref = reference_forward(x, p, stride)
        out_f32 = out.astype(jnp.float32)
        err = float(jnp.max(jnp.abs(out_f32 - ref)))
        assert jnp.allclose(out_f32, ref, rtol=rtol, atol=atol), err

    # stride=2 -> downsample path (conv1, conv3x3, fused pool+conv3+convd+add+relu)
    run_case(16, 8, 2)
    # stride=1, inplanes == 4*planes -> identity residual path
    run_case(32, 8, 1)
    # stride=1 with channel change -> downsample path with trivial (s=1) pooling
    run_case(16, 8, 1)
    # bf16 activations/weights, f32 accumulation
    run_case(16, 8, 2, dtype=jnp.bfloat16, rtol=5e-2, atol=1e-1)

    print("KERNEL_OK")
</pallas_src>

<mosaic_0001>
module attributes {stable_mosaic.version = 11 : i64} {
  func.func @_mm_bias_kernel(%arg0: i32, %arg1: memref<512x16xf32, #tpu.memory_space<vmem>>, %arg2: memref<16x8xf32, #tpu.memory_space<vmem>>, %arg3: memref<1x8xf32, #tpu.memory_space<vmem>>, %arg4: memref<512x8xf32, #tpu.memory_space<vmem>>) attributes {dimension_semantics = [#tpu.dimension_semantics<parallel>], iteration_bounds = array<i64: 1>, scalar_prefetch = 0 : i64, scratch_operands = 0 : i64, tpu.core_type = #tpu.core_type<tc>, window_params = [{transform_indices = @transform_0, window_bounds = array<i64: 512, 16>}, {pipeline_mode = #tpu.pipeline_mode<synchronous>, transform_indices = @transform_1, window_bounds = array<i64: 16, 8>}, {pipeline_mode = #tpu.pipeline_mode<synchronous>, transform_indices = @transform_2, window_bounds = array<i64: 1, 8>}, {transform_indices = @transform_3, window_bounds = array<i64: 512, 8>}]} {
    %c0 = arith.constant 0 : index
    %c0_0 = arith.constant 0 : index
    %0 = vector.load %arg1[%c0, %c0_0] : memref<512x16xf32, #tpu.memory_space<vmem>>, vector<512x16xf32>
    %c0_1 = arith.constant 0 : index
    %c0_2 = arith.constant 0 : index
    %1 = vector.load %arg2[%c0_1, %c0_2] : memref<16x8xf32, #tpu.memory_space<vmem>>, vector<16x8xf32>
    %cst = arith.constant dense<0.000000e+00> : vector<512x8xf32>
    %2 = tpu.matmul %0, %1, %cst {dimension_numbers = #tpu.dot_dimension_numbers<[1], [0], [0], [1], [0, 0, 1, 1], [], []>} : vector<512x16xf32>, vector<16x8xf32>, vector<512x8xf32> -> vector<512x8xf32>
    %c0_3 = arith.constant 0 : index
    %c0_4 = arith.constant 0 : index
    %3 = vector.load %arg3[%c0_3, %c0_4] : memref<1x8xf32, #tpu.memory_space<vmem>>, vector<1x8xf32>
    %4 = vector.broadcast %3 : vector<1x8xf32> to vector<512x8xf32>
    %5 = arith.addf %2, %4 : vector<512x8xf32>
    %cst_5 = arith.constant 0.000000e+00 : f32
    %6 = vector.broadcast %cst_5 : f32 to vector<512x8xf32>
    %7 = arith.maximumf %5, %6 : vector<512x8xf32>
    %c0_6 = arith.constant 0 : index
    %c0_7 = arith.constant 0 : index
    %8 = vector.load %arg4[%c0_6, %c0_7] : memref<512x8xf32, #tpu.memory_space<vmem>>, vector<512x8xf32>
    tpu.vector_store %arg4[%c0_6, %c0_7], %7 {strides = array<i32>} : memref<512x8xf32, #tpu.memory_space<vmem>>, vector<512x8xf32>,
    return
  }
  func.func @transform_0(%arg0: i32) -> (i32, i32) {
    %c0_i32 = arith.constant 0 : i32
    %c0_i32_0 = arith.constant 0 : i32
    return %arg0, %c0_i32 : i32, i32
  }
  func.func @transform_1(%arg0: i32) -> (i32, i32) {
    %c0_i32 = arith.constant 0 : i32
    %c0_i32_0 = arith.constant 0 : i32
    %c0_i32_1 = arith.constant 0 : i32
    return %c0_i32, %c0_i32_0 : i32, i32
  }
  func.func @transform_2(%arg0: i32) -> (i32, i32) {
    %c0_i32 = arith.constant 0 : i32
    %c0_i32_0 = arith.constant 0 : i32
    %c0_i32_1 = arith.constant 0 : i32
    return %c0_i32, %c0_i32_0 : i32, i32
  }
  func.func @transform_3(%arg0: i32) -> (i32, i32) {
    %c0_i32 = arith.constant 0 : i32
    %c0_i32_0 = arith.constant 0 : i32
    return %arg0, %c0_i32 : i32, i32
  }
}

</mosaic_0001>

<bundles_post_ra>
// kernel: tpu_custom_call.1
= control target key start
LH: loop header
LB: loop body
LE: loop exit
PB: predicated region body
PF: predicated region fallthrough
CT: control target
= control target key end

     0   :  { %vm87_vm0 = vcmask 130048   ;;  %vm729_vm1 = vcmask 64512   ;;  %s1642_s1 = inlined_call_operand.vmem [shape: f32[16,8], index: 1, kind: input, shape index: {}]   ;;  %s1643_s0 = inlined_call_operand.vmem [shape: f32[512,16], index: 0, kind: input, shape index: {}]   ;;  %s1644_s2 = inlined_call_operand.vmem [shape: f32[1,8], index: 2, kind: input, shape index: {}]   ;;  %s1645_s3 = inlined_call_operand.vmem [shape: f32[512,8], index: 3, kind: output, shape index: {}]  }
   0x1   :  { %v78_v0 = vld [vmem:[%s1642_s1] sm:$0xff]  ;;  %v79_v1 = vld [vmem:[%s1642_s1 + $0x8] sm:$0xff]  ;;  %v16_v7 = vld [vmem:[%s1643_s0 + $0x10] sm:$0xff] }
   0x2   :  { %v14_v2 = vld [vmem:[%s1643_s0] sm:$0xff]  ;;  %v1029_v3 = vpack.c.bf16 %v79_v1, %v78_v0  ;;  %v15_v5 = vld [vmem:[%s1643_s0 + $0x8] sm:$0xff]  ;;  %v48_v8 = vld [vmem:[%s1643_s0 + $0x110] sm:$0xff] }
   0x3   :  { %933 = vmatprep.mubr.msk.f32.mxu0 %vm87_vm0, %v14_v2  ;;  %v46_v4 = vld [vmem:[%s1643_s0 + $0x100] sm:$0xff]  ;;  %v47_v6 = vld [vmem:[%s1643_s0 + $0x108] sm:$0xff]  ;;  %v17_v9 = vld [vmem:[%s1643_s0 + $0x18] sm:$0xff] }
   0x4   :  { %981 = vmatprep.mubr.msk.f32.mxu1 %vm87_vm0, %v46_v4  ;;  %1030 = vmatprep.subr.bf16.mxu0 %v1029_v3  ;;  %v49_v10 = vld [vmem:[%s1643_s0 + $0x118] sm:$0xff]  ;;  %v18_v11 = vld [vmem:[%s1643_s0 + $0x20] sm:$0xff]  ;;  %v19_v13 = vld [vmem:[%s1643_s0 + $0x28] sm:$0xff] }
   0x5   :  { %1033 = vmatprep.subr.bf16.mxu1 %v1029_v3  ;;  %1032 = vmatpush3.bf16.msra.mxu0 %v1029_v3  ;;  %v50_v12 = vld [vmem:[%s1643_s0 + $0x120] sm:$0xff]  ;;  %v51_v14 = vld [vmem:[%s1643_s0 + $0x128] sm:$0xff]  ;;  %v20_v15 = vld [vmem:[%s1643_s0 + $0x30] sm:$0xff] }
   0x6   :  { %1034 = vmatpush3.bf16.msra.mxu1 %v1029_v3  ;;  %v52_v16 = vld [vmem:[%s1643_s0 + $0x130] sm:$0xff]  ;;  %v21_v17 = vld [vmem:[%s1643_s0 + $0x38] sm:$0xff]  ;;  %v22_v19 = vld [vmem:[%s1643_s0 + $0x40] sm:$0xff] }
   0x7   :  { %v53_v18 = vld [vmem:[%s1643_s0 + $0x138] sm:$0xff]  ;;  %v54_v20 = vld [vmem:[%s1643_s0 + $0x140] sm:$0xff]  ;;  %v23_v21 = vld [vmem:[%s1643_s0 + $0x48] sm:$0xff] }
   0x8   :  { %934 = vmatmul.mubr.msk.f32.vlgmr.msra.gmra.mrb[0].mxu0 %vm87_vm0, %v15_v5  ;;  %v55_v22 = vld [vmem:[%s1643_s0 + $0x148] sm:$0xff]  ;;  %v24_v23 = vld [vmem:[%s1643_s0 + $0x50] sm:$0xff]  ;;  %v25_v25 = vld [vmem:[%s1643_s0 + $0x58] sm:$0xff] }
   0x9   :  { %982 = vmatmul.mubr.msk.f32.vlgmr.msra.gmra.mrb[0].mxu1 %vm87_vm0, %v47_v6  ;;  %936 = vmatprep.mubr.msk.f32.mxu0 %vm87_vm0, %v16_v7  ;;  %v56_v24 = vld [vmem:[%s1643_s0 + $0x150] sm:$0xff]  ;;  %v57_v26 = vld [vmem:[%s1643_s0 + $0x158] sm:$0xff]  ;;  %v26_v27 = vld [vmem:[%s1643_s0 + $0x60] sm:$0xff] }
   0xa   :  { %984 = vmatprep.mubr.msk.f32.mxu1 %vm87_vm0, %v48_v8  ;;  %v58_v28 = vld [vmem:[%s1643_s0 + $0x160] sm:$0xff]  ;;  %v27_v29 = vld [vmem:[%s1643_s0 + $0x68] sm:$0xff]  ;;  %v28_v31 = vld [vmem:[%s1643_s0 + $0x70] sm:$0xff] }
   0xb   :  { %v59_v30 = vld [vmem:[%s1643_s0 + $0x168] sm:$0xff]  ;;  %v60_v32 = vld [vmem:[%s1643_s0 + $0x170] sm:$0xff]  ;;  %v29_v33 = vld [vmem:[%s1643_s0 + $0x78] sm:$0xff] }
   0xc   :  { %937 = vmatmul.mubr.msk.f32.gmra.mrb[2].mxu0 %vm87_vm0, %v17_v9  ;;  %v61_v34 = vld [vmem:[%s1643_s0 + $0x178] sm:$0xff]  ;;  %v30_v35 = vld [vmem:[%s1643_s0 + $0x80] sm:$0xff]  ;;  %v31_v37 = vld [vmem:[%s1643_s0 + $0x88] sm:$0xff] }
   0xd   :  { %985 = vmatmul.mubr.msk.f32.gmra.mrb[2].mxu1 %vm87_vm0, %v49_v10  ;;  %939 = vmatprep.mubr.msk.f32.mxu0 %vm87_vm0, %v18_v11  ;;  %v62_v36 = vld [vmem:[%s1643_s0 + $0x180] sm:$0xff]  ;;  %v63_v38 = vld [vmem:[%s1643_s0 + $0x188] sm:$0xff]  ;;  %v32_v39 = vld [vmem:[%s1643_s0 + $0x90] sm:$0xff] }
   0xe   :  { %987 = vmatprep.mubr.msk.f32.mxu1 %vm87_vm0, %v50_v12  ;;  %v64_v40 = vld [vmem:[%s1643_s0 + $0x190] sm:$0xff]  ;;  %v33_v41 = vld [vmem:[%s1643_s0 + $0x98] sm:$0xff]  ;;  %v34_v43 = vld [vmem:[%s1643_s0 + $0xa0] sm:$0xff] }
   0xf   :  { %v65_v42 = vld [vmem:[%s1643_s0 + $0x198] sm:$0xff]  ;;  %v66_v44 = vld [vmem:[%s1643_s0 + $0x1a0] sm:$0xff]  ;;  %v35_v45 = vld [vmem:[%s1643_s0 + $0xa8] sm:$0xff] }
  0x10   :  { %940 = vmatmul.mubr.msk.f32.gmra.mrb[4].mxu0 %vm87_vm0, %v19_v13  ;;  %v67_v46 = vld [vmem:[%s1643_s0 + $0x1a8] sm:$0xff]  ;;  %v36_v47 = vld [vmem:[%s1643_s0 + $0xb0] sm:$0xff]  ;;  %v37_v49 = vld [vmem:[%s1643_s0 + $0xb8] sm:$0xff] }
  0x11   :  { %988 = vmatmul.mubr.msk.f32.gmra.mrb[4].mxu1 %vm87_vm0, %v51_v14  ;;  %942 = vmatprep.mubr.msk.f32.mxu0 %vm87_vm0, %v20_v15  ;;  %v68_v48 = vld [vmem:[%s1643_s0 + $0x1b0] sm:$0xff]  ;;  %v69_v50 = vld [vmem:[%s1643_s0 + $0x1b8] sm:$0xff]  ;;  %v38_v51 = vld [vmem:[%s1643_s0 + $0xc0] sm:$0xff] }
  0x12   :  { %990 = vmatprep.mubr.msk.f32.mxu1 %vm87_vm0, %v52_v16  ;;  %v70_v52 = vld [vmem:[%s1643_s0 + $0x1c0] sm:$0xff]  ;;  %v39_v53 = vld [vmem:[%s1643_s0 + $0xc8] sm:$0xff]  ;;  %v40_v55 = vld [vmem:[%s1643_s0 + $0xd0] sm:$0xff] }
  0x13   :  { %v71_v54 = vld [vmem:[%s1643_s0 + $0x1c8] sm:$0xff]  ;;  %v72_v56 = vld [vmem:[%s1643_s0 + $0x1d0] sm:$0xff]  ;;  %v41_v57 = vld [vmem:[%s1643_s0 + $0xd8] sm:$0xff] }
  0x14   :  { %943 = vmatmul.mubr.msk.f32.gmra.mrb[6].mxu0 %vm87_vm0, %v21_v17  ;;  %v73_v58 = vld [vmem:[%s1643_s0 + $0x1d8] sm:$0xff]  ;;  %v42_v59 = vld [vmem:[%s1643_s0 + $0xe0] sm:$0xff]  ;;  %v43_v61 = vld [vmem:[%s1643_s0 + $0xe8] sm:$0xff] }
  0x15   :  { %991 = vmatmul.mubr.msk.f32.gmra.mrb[6].mxu1 %vm87_vm0, %v53_v18  ;;  %945 = vmatprep.mubr.msk.f32.mxu0 %vm87_vm0, %v22_v19  ;;  %v74_v60 = vld [vmem:[%s1643_s0 + $0x1e0] sm:$0xff]  ;;  %v75_v62 = vld [vmem:[%s1643_s0 + $0x1e8] sm:$0xff]  ;;  %v44_v63 = vld [vmem:[%s1643_s0 + $0xf0] sm:$0xff] }
  0x16   :  { %993 = vmatprep.mubr.msk.f32.mxu1 %vm87_vm0, %v54_v20  ;;  %v76_v0 = vld [vmem:[%s1643_s0 + $0x1f0] sm:$0xff]  ;;  %v45_v1 = vld [vmem:[%s1643_s0 + $0xf8] sm:$0xff]  ;;  %v1320_v3 = vld [vmem:[%s1644_s2] ss:$0 sm:$0xff] }
  0x17   :  { %v77_v2 = vld [vmem:[%s1643_s0 + $0x1f8] sm:$0xff] }
  0x18   :  { %946 = vmatmul.mubr.msk.f32.gmra.mrb[8].mxu0 %vm87_vm0, %v23_v21 }
  0x19   :  { %994 = vmatmul.mubr.msk.f32.gmra.mrb[8].mxu1 %vm87_vm0, %v55_v22  ;;  %948 = vmatprep.mubr.msk.f32.mxu0 %vm87_vm0, %v24_v23 }
  0x1a   :  { %996 = vmatprep.mubr.msk.f32.mxu1 %vm87_vm0, %v56_v24 }
  0x1c   :  { %949 = vmatmul.mubr.msk.f32.gmra.mrb[10].mxu0 %vm87_vm0, %v25_v25 }
  0x1d   :  { %997 = vmatmul.mubr.msk.f32.gmra.mrb[10].mxu1 %vm87_vm0, %v57_v26  ;;  %951 = vmatprep.mubr.msk.f32.mxu0 %vm87_vm0, %v26_v27 }
  0x1e   :  { %999 = vmatprep.mubr.msk.f32.mxu1 %vm87_vm0, %v58_v28 }
  0x20   :  { %952 = vmatmul.mubr.msk.f32.gmra.mrb[12].mxu0 %vm87_vm0, %v27_v29 }
  0x21   :  { %1000 = vmatmul.mubr.msk.f32.gmra.mrb[12].mxu1 %vm87_vm0, %v59_v30  ;;  %954 = vmatprep.mubr.msk.f32.mxu0 %vm87_vm0, %v28_v31 }
  0x22   :  { %1002 = vmatprep.mubr.msk.f32.mxu1 %vm87_vm0, %v60_v32 }
  0x24   :  { %955 = vmatmul.mubr.msk.f32.gmra.mrb[14].mxu0 %vm87_vm0, %v29_v33 }
  0x25   :  { %1003 = vmatmul.mubr.msk.f32.gmra.mrb[14].mxu1 %vm87_vm0, %v61_v34  ;;  %957 = vmatprep.mubr.msk.f32.mxu0 %vm87_vm0, %v30_v35 }
  0x26   :  { %1005 = vmatprep.mubr.msk.f32.mxu1 %vm87_vm0, %v62_v36 }
  0x28   :  { %958 = vmatmul.mubr.msk.f32.gmra.mrb[16].mxu0 %vm87_vm0, %v31_v37 }
  0x29   :  { %1006 = vmatmul.mubr.msk.f32.gmra.mrb[16].mxu1 %vm87_vm0, %v63_v38  ;;  %960 = vmatprep.mubr.msk.f32.mxu0 %vm87_vm0, %v32_v39 }
  0x2a   :  { %1008 = vmatprep.mubr.msk.f32.mxu1 %vm87_vm0, %v64_v40 }
  0x2c   :  { %961 = vmatmul.mubr.msk.f32.gmra.mrb[18].mxu0 %vm87_vm0, %v33_v41 }
  0x2d   :  { %1009 = vmatmul.mubr.msk.f32.gmra.mrb[18].mxu1 %vm87_vm0, %v65_v42  ;;  %963 = vmatprep.mubr.msk.f32.mxu0 %vm87_vm0, %v34_v43 }
  0x2e   :  { %1011 = vmatprep.mubr.msk.f32.mxu1 %vm87_vm0, %v66_v44 }
  0x30   :  { %964 = vmatmul.mubr.msk.f32.gmra.mrb[20].mxu0 %vm87_vm0, %v35_v45 }
  0x31   :  { %1012 = vmatmul.mubr.msk.f32.gmra.mrb[20].mxu1 %vm87_vm0, %v67_v46  ;;  %966 = vmatprep.mubr.msk.f32.mxu0 %vm87_vm0, %v36_v47 }
  0x32   :  { %1014 = vmatprep.mubr.msk.f32.mxu1 %vm87_vm0, %v68_v48 }
  0x34   :  { %967 = vmatmul.mubr.msk.f32.gmra.mrb[22].mxu0 %vm87_vm0, %v37_v49 }
  0x35   :  { %1015 = vmatmul.mubr.msk.f32.gmra.mrb[22].mxu1 %vm87_vm0, %v69_v50  ;;  %969 = vmatprep.mubr.msk.f32.mxu0 %vm87_vm0, %v38_v51 }
  0x36   :  { %1017 = vmatprep.mubr.msk.f32.mxu1 %vm87_vm0, %v70_v52 }
  0x38   :  { %970 = vmatmul.mubr.msk.f32.gmra.mrb[24].mxu0 %vm87_vm0, %v39_v53 }
  0x39   :  { %1018 = vmatmul.mubr.msk.f32.gmra.mrb[24].mxu1 %vm87_vm0, %v71_v54  ;;  %972 = vmatprep.mubr.msk.f32.mxu0 %vm87_vm0, %v40_v55 }
  0x3a   :  { %1020 = vmatprep.mubr.msk.f32.mxu1 %vm87_vm0, %v72_v56 }
  0x3c   :  { %973 = vmatmul.mubr.msk.f32.gmra.mrb[26].mxu0 %vm87_vm0, %v41_v57 }
  0x3d   :  { %1021 = vmatmul.mubr.msk.f32.gmra.mrb[26].mxu1 %vm87_vm0, %v73_v58  ;;  %975 = vmatprep.mubr.msk.f32.mxu0 %vm87_vm0, %v42_v59 }
  0x3e   :  { %1023 = vmatprep.mubr.msk.f32.mxu1 %vm87_vm0, %v74_v60 }
  0x40   :  { %976 = vmatmul.mubr.msk.f32.gmra.mrb[28].mxu0 %vm87_vm0, %v43_v61 }
  0x41   :  { %1024 = vmatmul.mubr.msk.f32.gmra.mrb[28].mxu1 %vm87_vm0, %v75_v62  ;;  %978 = vmatprep.mubr.msk.f32.mxu0 %vm87_vm0, %v44_v63 }
  0x42   :  { %1026 = vmatprep.mubr.msk.f32.mxu1 %vm87_vm0, %v76_v0 }
  0x44   :  { %979 = vmatmul.mubr.msk.f32.gmra.mrb[30].mxu0 %vm87_vm0, %v45_v1 }
  0x45   :  { %1027 = vmatmul.mubr.msk.f32.gmra.mrb[30].mxu1 %vm87_vm0, %v77_v2 }
  0xdb   :  { %v935_v4 = vpop.f32.mrb[0].mxu0 }
  0xdc   :  { %v983_v5 = vpop.f32.mrb[0].mxu1  ;;  %v352_v6 = vadd.f32 %v935_v4, %v1320_v3  ;;  %v346_v8 = vpop.f32.mrb[1].mxu0 }
  0xdd   :  { %v512_v7 = vadd.f32 %v983_v5, %v1320_v3  ;;  %v506_v9 = vpop.f32.mrb[1].mxu1  ;;  %v347_v10 = vadd.f32 %v1320_v3, %v346_v8 }
  0xde   :  { %v507_v11 = vadd.f32 %v1320_v3, %v506_v9  ;;  %v666_v12 = vmax.f32 %v352_v6, 0.0 }
  0xdf   :  { %v698_v13 = vmax.f32 %v512_v7, 0.0  ;;  %v665_v14 = vmax.f32 %v347_v10, 0.0  ;;  %v938_v16 = vpop.f32.mrb[2].mxu0 }
  0xe0   :  { %v697_v15 = vmax.f32 %v507_v11, 0.0  ;;  %v986_v17 = vpop.f32.mrb[2].mxu1  ;;  %731 = vst.msk [vmem:[%s1645_s3 + $0x8] sm:$0xff] %vm729_vm1, %v666_v12  ;;  %v362_v18 = vadd.f32 %v938_v16, %v1320_v3  ;;  %v356_v20 = vpop.f32.mrb[3].mxu0 }
  0xe1   :  { %763 = vst.msk [vmem:[%s1645_s3 + $0x108] sm:$0xff] %vm729_vm1, %v698_v13  ;;  %v522_v19 = vadd.f32 %v986_v17, %v1320_v3  ;;  %v516_v21 = vpop.f32.mrb[3].mxu1  ;;  %730 = vst.msk [vmem:[%s1645_s3] sm:$0xff] %vm729_vm1, %v665_v14  ;;  %v357_v22 = vadd.f32 %v1320_v3, %v356_v20 }
  0xe2   :  { %762 = vst.msk [vmem:[%s1645_s3 + $0x100] sm:$0xff] %vm729_vm1, %v697_v15  ;;  %v517_v23 = vadd.f32 %v1320_v3, %v516_v21  ;;  %v668_v24 = vmax.f32 %v362_v18, 0.0 }
  0xe3   :  { %v700_v25 = vmax.f32 %v522_v19, 0.0  ;;  %v667_v26 = vmax.f32 %v357_v22, 0.0  ;;  %v941_v28 = vpop.f32.mrb[4].mxu0 }
  0xe4   :  { %v699_v27 = vmax.f32 %v517_v23, 0.0  ;;  %v989_v29 = vpop.f32.mrb[4].mxu1  ;;  %733 = vst.msk [vmem:[%s1645_s3 + $0x18] sm:$0xff] %vm729_vm1, %v668_v24  ;;  %v372_v30 = vadd.f32 %v941_v28, %v1320_v3  ;;  %v366_v32 = vpop.f32.mrb[5].mxu0 }
  0xe5   :  { %765 = vst.msk [vmem:[%s1645_s3 + $0x118] sm:$0xff] %vm729_vm1, %v700_v25  ;;  %v532_v31 = vadd.f32 %v989_v29, %v1320_v3  ;;  %v526_v33 = vpop.f32.mrb[5].mxu1  ;;  %732 = vst.msk [vmem:[%s1645_s3 + $0x10] sm:$0xff] %vm729_vm1, %v667_v26  ;;  %v367_v34 = vadd.f32 %v1320_v3, %v366_v32 }
  0xe6   :  { %764 = vst.msk [vmem:[%s1645_s3 + $0x110] sm:$0xff] %vm729_vm1, %v699_v27  ;;  %v527_v35 = vadd.f32 %v1320_v3, %v526_v33  ;;  %v670_v36 = vmax.f32 %v372_v30, 0.0 }
  0xe7   :  { %v702_v37 = vmax.f32 %v532_v31, 0.0  ;;  %v669_v38 = vmax.f32 %v367_v34, 0.0  ;;  %v944_v40 = vpop.f32.mrb[6].mxu0 }
  0xe8   :  { %v701_v39 = vmax.f32 %v527_v35, 0.0  ;;  %v992_v41 = vpop.f32.mrb[6].mxu1  ;;  %735 = vst.msk [vmem:[%s1645_s3 + $0x28] sm:$0xff] %vm729_vm1, %v670_v36  ;;  %v382_v42 = vadd.f32 %v944_v40, %v1320_v3  ;;  %v376_v44 = vpop.f32.mrb[7].mxu0 }
  0xe9   :  { %767 = vst.msk [vmem:[%s1645_s3 + $0x128] sm:$0xff] %vm729_vm1, %v702_v37  ;;  %v542_v43 = vadd.f32 %v992_v41, %v1320_v3  ;;  %v536_v45 = vpop.f32.mrb[7].mxu1  ;;  %734 = vst.msk [vmem:[%s1645_s3 + $0x20] sm:$0xff] %vm729_vm1, %v669_v38  ;;  %v377_v46 = vadd.f32 %v1320_v3, %v376_v44 }
  0xea   :  { %766 = vst.msk [vmem:[%s1645_s3 + $0x120] sm:$0xff] %vm729_vm1, %v701_v39  ;;  %v537_v47 = vadd.f32 %v1320_v3, %v536_v45  ;;  %v672_v48 = vmax.f32 %v382_v42, 0.0 }
  0xeb   :  { %v704_v49 = vmax.f32 %v542_v43, 0.0  ;;  %v671_v50 = vmax.f32 %v377_v46, 0.0  ;;  %v947_v52 = vpop.f32.mrb[8].mxu0 }
  0xec   :  { %v703_v51 = vmax.f32 %v537_v47, 0.0  ;;  %v995_v53 = vpop.f32.mrb[8].mxu1  ;;  %737 = vst.msk [vmem:[%s1645_s3 + $0x38] sm:$0xff] %vm729_vm1, %v672_v48  ;;  %v392_v54 = vadd.f32 %v947_v52, %v1320_v3  ;;  %v386_v56 = vpop.f32.mrb[9].mxu0 }
  0xed   :  { %769 = vst.msk [vmem:[%s1645_s3 + $0x138] sm:$0xff] %vm729_vm1, %v704_v49  ;;  %v552_v55 = vadd.f32 %v995_v53, %v1320_v3  ;;  %v546_v57 = vpop.f32.mrb[9].mxu1  ;;  %736 = vst.msk [vmem:[%s1645_s3 + $0x30] sm:$0xff] %vm729_vm1, %v671_v50  ;;  %v387_v58 = vadd.f32 %v1320_v3, %v386_v56 }
  0xee   :  { %768 = vst.msk [vmem:[%s1645_s3 + $0x130] sm:$0xff] %vm729_vm1, %v703_v51  ;;  %v547_v59 = vadd.f32 %v1320_v3, %v546_v57  ;;  %v674_v60 = vmax.f32 %v392_v54, 0.0 }
  0xef   :  { %v706_v61 = vmax.f32 %v552_v55, 0.0  ;;  %v673_v62 = vmax.f32 %v387_v58, 0.0  ;;  %v950_v0 = vpop.f32.mrb[10].mxu0 }
  0xf0   :  { %v705_v63 = vmax.f32 %v547_v59, 0.0  ;;  %v998_v1 = vpop.f32.mrb[10].mxu1  ;;  %739 = vst.msk [vmem:[%s1645_s3 + $0x48] sm:$0xff] %vm729_vm1, %v674_v60  ;;  %v402_v2 = vadd.f32 %v950_v0, %v1320_v3  ;;  %v396_v5 = vpop.f32.mrb[11].mxu0 }
  0xf1   :  { %771 = vst.msk [vmem:[%s1645_s3 + $0x148] sm:$0xff] %vm729_vm1, %v706_v61  ;;  %v562_v4 = vadd.f32 %v998_v1, %v1320_v3  ;;  %v556_v6 = vpop.f32.mrb[11].mxu1  ;;  %738 = vst.msk [vmem:[%s1645_s3 + $0x40] sm:$0xff] %vm729_vm1, %v673_v62  ;;  %v397_v7 = vadd.f32 %v1320_v3, %v396_v5 }
  0xf2   :  { %770 = vst.msk [vmem:[%s1645_s3 + $0x140] sm:$0xff] %vm729_vm1, %v705_v63  ;;  %v557_v8 = vadd.f32 %v1320_v3, %v556_v6  ;;  %v676_v9 = vmax.f32 %v402_v2, 0.0 }
  0xf3   :  { %v708_v10 = vmax.f32 %v562_v4, 0.0  ;;  %v675_v11 = vmax.f32 %v397_v7, 0.0  ;;  %v953_v13 = vpop.f32.mrb[12].mxu0 }
  0xf4   :  { %v707_v12 = vmax.f32 %v557_v8, 0.0  ;;  %v1001_v14 = vpop.f32.mrb[12].mxu1  ;;  %741 = vst.msk [vmem:[%s1645_s3 + $0x58] sm:$0xff] %vm729_vm1, %v676_v9  ;;  %v412_v15 = vadd.f32 %v953_v13, %v1320_v3  ;;  %v406_v17 = vpop.f32.mrb[13].mxu0 }
  0xf5   :  { %773 = vst.msk [vmem:[%s1645_s3 + $0x158] sm:$0xff] %vm729_vm1, %v708_v10  ;;  %v572_v16 = vadd.f32 %v1001_v14, %v1320_v3  ;;  %v566_v18 = vpop.f32.mrb[13].mxu1  ;;  %740 = vst.msk [vmem:[%s1645_s3 + $0x50] sm:$0xff] %vm729_vm1, %v675_v11  ;;  %v407_v19 = vadd.f32 %v1320_v3, %v406_v17 }
  0xf6   :  { %772 = vst.msk [vmem:[%s1645_s3 + $0x150] sm:$0xff] %vm729_vm1, %v707_v12  ;;  %v567_v20 = vadd.f32 %v1320_v3, %v566_v18  ;;  %v678_v21 = vmax.f32 %v412_v15, 0.0 }
  0xf7   :  { %v710_v22 = vmax.f32 %v572_v16, 0.0  ;;  %v677_v23 = vmax.f32 %v407_v19, 0.0  ;;  %v956_v25 = vpop.f32.mrb[14].mxu0 }
  0xf8   :  { %v709_v24 = vmax.f32 %v567_v20, 0.0  ;;  %v1004_v26 = vpop.f32.mrb[14].mxu1  ;;  %743 = vst.msk [vmem:[%s1645_s3 + $0x68] sm:$0xff] %vm729_vm1, %v678_v21  ;;  %v422_v27 = vadd.f32 %v956_v25, %v1320_v3  ;;  %v416_v29 = vpop.f32.mrb[15].mxu0 }
  0xf9   :  { %775 = vst.msk [vmem:[%s1645_s3 + $0x168] sm:$0xff] %vm729_vm1, %v710_v22  ;;  %v582_v28 = vadd.f32 %v1004_v26, %v1320_v3  ;;  %v576_v30 = vpop.f32.mrb[15].mxu1  ;;  %742 = vst.msk [vmem:[%s1645_s3 + $0x60] sm:$0xff] %vm729_vm1, %v677_v23  ;;  %v417_v31 = vadd.f32 %v1320_v3, %v416_v29 }
  0xfa   :  { %774 = vst.msk [vmem:[%s1645_s3 + $0x160] sm:$0xff] %vm729_vm1, %v709_v24  ;;  %v577_v32 = vadd.f32 %v1320_v3, %v576_v30  ;;  %v680_v33 = vmax.f32 %v422_v27, 0.0 }
  0xfb   :  { %v712_v34 = vmax.f32 %v582_v28, 0.0  ;;  %v679_v35 = vmax.f32 %v417_v31, 0.0  ;;  %v959_v37 = vpop.f32.mrb[16].mxu0 }
  0xfc   :  { %v711_v36 = vmax.f32 %v577_v32, 0.0  ;;  %v1007_v38 = vpop.f32.mrb[16].mxu1  ;;  %745 = vst.msk [vmem:[%s1645_s3 + $0x78] sm:$0xff] %vm729_vm1, %v680_v33  ;;  %v432_v39 = vadd.f32 %v959_v37, %v1320_v3  ;;  %v426_v41 = vpop.f32.mrb[17].mxu0 }
  0xfd   :  { %777 = vst.msk [vmem:[%s1645_s3 + $0x178] sm:$0xff] %vm729_vm1, %v712_v34  ;;  %v592_v40 = vadd.f32 %v1007_v38, %v1320_v3  ;;  %v586_v42 = vpop.f32.mrb[17].mxu1  ;;  %744 = vst.msk [vmem:[%s1645_s3 + $0x70] sm:$0xff] %vm729_vm1, %v679_v35  ;;  %v427_v43 = vadd.f32 %v1320_v3, %v426_v41 }
  0xfe   :  { %776 = vst.msk [vmem:[%s1645_s3 + $0x170] sm:$0xff] %vm729_vm1, %v711_v36  ;;  %v587_v44 = vadd.f32 %v1320_v3, %v586_v42  ;;  %v682_v45 = vmax.f32 %v432_v39, 0.0 }
  0xff   :  { %v714_v46 = vmax.f32 %v592_v40, 0.0  ;;  %v681_v47 = vmax.f32 %v427_v43, 0.0  ;;  %v962_v49 = vpop.f32.mrb[18].mxu0 }
 0x100   :  { %v713_v48 = vmax.f32 %v587_v44, 0.0  ;;  %v1010_v50 = vpop.f32.mrb[18].mxu1  ;;  %747 = vst.msk [vmem:[%s1645_s3 + $0x88] sm:$0xff] %vm729_vm1, %v682_v45  ;;  %v442_v51 = vadd.f32 %v962_v49, %v1320_v3  ;;  %v436_v53 = vpop.f32.mrb[19].mxu0 }
 0x101   :  { %779 = vst.msk [vmem:[%s1645_s3 + $0x188] sm:$0xff] %vm729_vm1, %v714_v46  ;;  %v602_v52 = vadd.f32 %v1010_v50, %v1320_v3  ;;  %v596_v54 = vpop.f32.mrb[19].mxu1  ;;  %746 = vst.msk [vmem:[%s1645_s3 + $0x80] sm:$0xff] %vm729_vm1, %v681_v47  ;;  %v437_v55 = vadd.f32 %v1320_v3, %v436_v53 }
 0x102   :  { %778 = vst.msk [vmem:[%s1645_s3 + $0x180] sm:$0xff] %vm729_vm1, %v713_v48  ;;  %v597_v56 = vadd.f32 %v1320_v3, %v596_v54  ;;  %v684_v57 = vmax.f32 %v442_v51, 0.0 }
 0x103   :  { %v716_v58 = vmax.f32 %v602_v52, 0.0  ;;  %v683_v59 = vmax.f32 %v437_v55, 0.0  ;;  %v965_v61 = vpop.f32.mrb[20].mxu0 }
 0x104   :  { %v715_v60 = vmax.f32 %v597_v56, 0.0  ;;  %v1013_v62 = vpop.f32.mrb[20].mxu1  ;;  %749 = vst.msk [vmem:[%s1645_s3 + $0x98] sm:$0xff] %vm729_vm1, %v684_v57  ;;  %v452_v63 = vadd.f32 %v965_v61, %v1320_v3  ;;  %v446_v1 = vpop.f32.mrb[21].mxu0 }
 0x105   :  { %781 = vst.msk [vmem:[%s1645_s3 + $0x198] sm:$0xff] %vm729_vm1, %v716_v58  ;;  %v612_v0 = vadd.f32 %v1013_v62, %v1320_v3  ;;  %v606_v2 = vpop.f32.mrb[21].mxu1  ;;  %748 = vst.msk [vmem:[%s1645_s3 + $0x90] sm:$0xff] %vm729_vm1, %v683_v59  ;;  %v447_v4 = vadd.f32 %v1320_v3, %v446_v1 }
 0x106   :  { %780 = vst.msk [vmem:[%s1645_s3 + $0x190] sm:$0xff] %vm729_vm1, %v715_v60  ;;  %v607_v5 = vadd.f32 %v1320_v3, %v606_v2  ;;  %v686_v6 = vmax.f32 %v452_v63, 0.0 }
 0x107   :  { %v718_v7 = vmax.f32 %v612_v0, 0.0  ;;  %v685_v8 = vmax.f32 %v447_v4, 0.0  ;;  %v968_v10 = vpop.f32.mrb[22].mxu0 }
 0x108   :  { %v717_v9 = vmax.f32 %v607_v5, 0.0  ;;  %v1016_v11 = vpop.f32.mrb[22].mxu1  ;;  %751 = vst.msk [vmem:[%s1645_s3 + $0xa8] sm:$0xff] %vm729_vm1, %v686_v6  ;;  %v462_v12 = vadd.f32 %v968_v10, %v1320_v3  ;;  %v456_v14 = vpop.f32.mrb[23].mxu0 }
 0x109   :  { %783 = vst.msk [vmem:[%s1645_s3 + $0x1a8] sm:$0xff] %vm729_vm1, %v718_v7  ;;  %v622_v13 = vadd.f32 %v1016_v11, %v1320_v3  ;;  %v616_v15 = vpop.f32.mrb[23].mxu1  ;;  %750 = vst.msk [vmem:[%s1645_s3 + $0xa0] sm:$0xff] %vm729_vm1, %v685_v8  ;;  %v457_v16 = vadd.f32 %v1320_v3, %v456_v14 }
 0x10a   :  { %782 = vst.msk [vmem:[%s1645_s3 + $0x1a0] sm:$0xff] %vm729_vm1, %v717_v9  ;;  %v617_v17 = vadd.f32 %v1320_v3, %v616_v15  ;;  %v688_v18 = vmax.f32 %v462_v12, 0.0 }
 0x10b   :  { %v720_v19 = vmax.f32 %v622_v13, 0.0  ;;  %v687_v20 = vmax.f32 %v457_v16, 0.0  ;;  %v971_v22 = vpop.f32.mrb[24].mxu0 }
 0x10c   :  { %v719_v21 = vmax.f32 %v617_v17, 0.0  ;;  %v1019_v23 = vpop.f32.mrb[24].mxu1  ;;  %753 = vst.msk [vmem:[%s1645_s3 + $0xb8] sm:$0xff] %vm729_vm1, %v688_v18  ;;  %v472_v24 = vadd.f32 %v971_v22, %v1320_v3  ;;  %v466_v26 = vpop.f32.mrb[25].mxu0 }
 0x10d   :  { %785 = vst.msk [vmem:[%s1645_s3 + $0x1b8] sm:$0xff] %vm729_vm1, %v720_v19  ;;  %v632_v25 = vadd.f32 %v1019_v23, %v1320_v3  ;;  %v626_v27 = vpop.f32.mrb[25].mxu1  ;;  %752 = vst.msk [vmem:[%s1645_s3 + $0xb0] sm:$0xff] %vm729_vm1, %v687_v20  ;;  %v467_v28 = vadd.f32 %v1320_v3, %v466_v26 }
 0x10e   :  { %784 = vst.msk [vmem:[%s1645_s3 + $0x1b0] sm:$0xff] %vm729_vm1, %v719_v21  ;;  %v627_v29 = vadd.f32 %v1320_v3, %v626_v27  ;;  %v690_v30 = vmax.f32 %v472_v24, 0.0 }
 0x10f   :  { %v722_v31 = vmax.f32 %v632_v25, 0.0  ;;  %v689_v32 = vmax.f32 %v467_v28, 0.0  ;;  %v974_v34 = vpop.f32.mrb[26].mxu0 }
 0x110   :  { %v721_v33 = vmax.f32 %v627_v29, 0.0  ;;  %v1022_v35 = vpop.f32.mrb[26].mxu1  ;;  %755 = vst.msk [vmem:[%s1645_s3 + $0xc8] sm:$0xff] %vm729_vm1, %v690_v30  ;;  %v482_v36 = vadd.f32 %v974_v34, %v1320_v3  ;;  %v476_v38 = vpop.f32.mrb[27].mxu0 }
 0x111   :  { %787 = vst.msk [vmem:[%s1645_s3 + $0x1c8] sm:$0xff] %vm729_vm1, %v722_v31  ;;  %v642_v37 = vadd.f32 %v1022_v35, %v1320_v3  ;;  %v636_v39 = vpop.f32.mrb[27].mxu1  ;;  %754 = vst.msk [vmem:[%s1645_s3 + $0xc0] sm:$0xff] %vm729_vm1, %v689_v32  ;;  %v477_v40 = vadd.f32 %v1320_v3, %v476_v38 }
 0x112   :  { %786 = vst.msk [vmem:[%s1645_s3 + $0x1c0] sm:$0xff] %vm729_vm1, %v721_v33  ;;  %v637_v41 = vadd.f32 %v1320_v3, %v636_v39  ;;  %v692_v42 = vmax.f32 %v482_v36, 0.0 }
 0x113   :  { %v724_v43 = vmax.f32 %v642_v37, 0.0  ;;  %v691_v44 = vmax.f32 %v477_v40, 0.0  ;;  %v977_v46 = vpop.f32.mrb[28].mxu0 }
 0x114   :  { %v723_v45 = vmax.f32 %v637_v41, 0.0  ;;  %v1025_v47 = vpop.f32.mrb[28].mxu1  ;;  %757 = vst.msk [vmem:[%s1645_s3 + $0xd8] sm:$0xff] %vm729_vm1, %v692_v42  ;;  %v492_v48 = vadd.f32 %v977_v46, %v1320_v3  ;;  %v486_v50 = vpop.f32.mrb[29].mxu0 }
 0x115   :  { %789 = vst.msk [vmem:[%s1645_s3 + $0x1d8] sm:$0xff] %vm729_vm1, %v724_v43  ;;  %v652_v49 = vadd.f32 %v1025_v47, %v1320_v3  ;;  %v646_v51 = vpop.f32.mrb[29].mxu1  ;;  %756 = vst.msk [vmem:[%s1645_s3 + $0xd0] sm:$0xff] %vm729_vm1, %v691_v44  ;;  %v487_v52 = vadd.f32 %v1320_v3, %v486_v50 }
 0x116   :  { %788 = vst.msk [vmem:[%s1645_s3 + $0x1d0] sm:$0xff] %vm729_vm1, %v723_v45  ;;  %v647_v53 = vadd.f32 %v1320_v3, %v646_v51  ;;  %v694_v54 = vmax.f32 %v492_v48, 0.0 }
 0x117   :  { %v726_v55 = vmax.f32 %v652_v49, 0.0  ;;  %v693_v56 = vmax.f32 %v487_v52, 0.0  ;;  %v980_v58 = vpop.f32.mrb[30].mxu0 }
 0x118   :  { %v725_v57 = vmax.f32 %v647_v53, 0.0  ;;  %v1028_v59 = vpop.f32.mrb[30].mxu1  ;;  %759 = vst.msk [vmem:[%s1645_s3 + $0xe8] sm:$0xff] %vm729_vm1, %v694_v54  ;;  %v502_v60 = vadd.f32 %v980_v58, %v1320_v3  ;;  %v496_v62 = vpop.f32.mrb[31].mxu0 }
 0x119   :  { %791 = vst.msk [vmem:[%s1645_s3 + $0x1e8] sm:$0xff] %vm729_vm1, %v726_v55  ;;  %v662_v61 = vadd.f32 %v1028_v59, %v1320_v3  ;;  %v656_v63 = vpop.f32.mrb[31].mxu1  ;;  %758 = vst.msk [vmem:[%s1645_s3 + $0xe0] sm:$0xff] %vm729_vm1, %v693_v56  ;;  %v497_v0 = vadd.f32 %v1320_v3, %v496_v62 }
 0x11a   :  { %790 = vst.msk [vmem:[%s1645_s3 + $0x1e0] sm:$0xff] %vm729_vm1, %v725_v57  ;;  %v657_v1 = vadd.f32 %v1320_v3, %v656_v63  ;;  %v696_v2 = vmax.f32 %v502_v60, 0.0 }
 0x11b   :  { %v728_v4 = vmax.f32 %v662_v61, 0.0  ;;  %v695_v5 = vmax.f32 %v497_v0, 0.0 }
 0x11c   :  { %v727_v6 = vmax.f32 %v657_v1, 0.0  ;;  %761 = vst.msk [vmem:[%s1645_s3 + $0xf8] sm:$0xff] %vm729_vm1, %v696_v2 }
 0x11d   :  { %793 = vst.msk [vmem:[%s1645_s3 + $0x1f8] sm:$0xff] %vm729_vm1, %v728_v4  ;;  %760 = vst.msk [vmem:[%s1645_s3 + $0xf0] sm:$0xff] %vm729_vm1, %v695_v5 }
 0x11e   :  { %792 = vst.msk [vmem:[%s1645_s3 + $0x1f0] sm:$0xff] %vm729_vm1, %v727_v6 }

</bundles_post_ra>
